<compile_context>
chip_gen: v6e
topology: v6e:2x2x1
jax: 0.10.0
libtpu: 0.0.40
codegen_flags: <defaults>
</compile_context>

<pallas_src>
import jax
import jax.numpy as jnp
from jax import lax
from jax.experimental import pallas as pl
from jax.experimental.pallas import tpu as pltpu

NEG_INF = -1_000_000_000.0
_LANE = 128
_STATIC_UNROLL_MAX = 16        # static python chunk loop up to this many chunks
_BUDGET_OVERRIDE = None        # test hook: force a small per-block budget


def _device_budgets():
    """Returns (per-input-block byte budget, vmem_limit_bytes, is_v7x)."""
    if _BUDGET_OVERRIDE is not None:
        return _BUDGET_OVERRIDE, 32 * 1024 * 1024, False
    try:
        kind = jax.devices()[0].device_kind.lower()
    except Exception:
        kind = ""
    if "v7" in kind or "tpu7" in kind:
        return 10 * 1024 * 1024, 48 * 1024 * 1024, True
    if "v6" in kind:
        return 8 * 1024 * 1024, 64 * 1024 * 1024, False
    # v5e / unknown: conservative defaults.
    return 4 * 1024 * 1024, 32 * 1024 * 1024, False


def _round_up(x, m):
    return -(-x // m) * m


def _chunk_rows(TB, TD):
    """Rows per in-kernel compute chunk: keeps each f32 temp <= ~2 MiB."""
    rows = (2 * 1024 * 1024) // max(1, TB * TD * 4)
    cs = 8
    while cs * 2 <= min(rows, 64):
        cs *= 2
    return cs                                    # 8 / 16 / 32 / 64 (divides 128)


def _choose_tiles(B, S, D, itemsize, budget, is_v7x):
    """Pick (TB, TS, TD, CS, ns) so the native-dtype input block fits budget."""
    TB = B if B <= 8 else 8
    if D % _LANE == 0:
        tds = [k * _LANE for k in range(D // _LANE, 0, -1)]
    elif D < _LANE:
        tds = [D]
    else:
        tds = [D] + [k * _LANE for k in range(D // _LANE, 0, -1)]

    chosen = None
    # 1) Prefer a full-S block (ns == 1) with the widest TD that fits.
    for TD in tds:
        CS = _chunk_rows(TB, TD)
        TS = _round_up(S, CS)
        if TB * TS * TD * itemsize <= budget:
            chosen = (TB, TS, TD, CS, 1)
            break
    if chosen is None:
        # 2) Engage the S ("arbitrary") grid axis; TS multiple of 128.
        for TD in tds:
            CS = _chunk_rows(TB, TD)
            max_rows = budget // (TB * TD * itemsize)
            if max_rows >= _LANE:
                TS = min((max_rows // _LANE) * _LANE, _round_up(S, _LANE))
                chosen = (TB, TS, TD, CS, pl.cdiv(S, TS))
                break
    if chosen is None:
        # 3) Pathological fallback (huge D): smallest TD, minimum S tile.
        TD = tds[-1]
        chosen = (TB, _LANE, TD, _chunk_rows(TB, TD), pl.cdiv(S, _LANE))

    TB, TS, TD, CS, ns = chosen
    # v7x only: make sure >= 2 grid steps exist along a parallel axis so both
    # TensorCores get work (only when the tensor is non-trivially sized).
    nb, nd = pl.cdiv(B, TB), pl.cdiv(D, TD)
    if (is_v7x and nb * nd == 1 and B * S * D * itemsize >= (1 << 20)
            and D >= 2 * _LANE and D % _LANE == 0):
        TD = _round_up((D + 1) // 2, _LANE)
        CS = _chunk_rows(TB, TD)
        if ns == 1:
            TS = _round_up(TS, CS)
    return TB, TS, TD, CS, ns


def _num_kernel_outputs(kf):
    return (int(kf["cls"]) + int(kf["max"])
            + int(kf["mean"] or kf["mean_sqrt"]) + int(kf["weightedmean"]))


def _make_pool_kernel(kflags, TS, CS, has_s_axis):
    """Kernel for one (batch-tile, D-tile, S-tile) grid point.

    Inputs : mask_ref (Cn, TB, CS) f32, [wmask_ref (Cn, TB, CS) f32,]
             x_ref (TB, TS, TD) native dtype.
    Outputs: f32 (TB, TD) resident accumulators, in order cls?, max?,
             masked-sum?, position-weighted-sum?.
    """
    assert TS % CS == 0
    n_chunk = TS // CS
    need_w = kflags["weightedmean"]
    want_cls = kflags["cls"]
    want_max = kflags["max"]
    want_sum = kflags["mean"] or kflags["mean_sqrt"]
    want_wsum = kflags["weightedmean"]

    def kernel(*refs):
        i = 0
        mask_ref = refs[i]; i += 1
        wmask_ref = None
        if need_w:
            wmask_ref = refs[i]; i += 1
        x_ref = refs[i]; i += 1
        outs = list(refs[i:])

        oi = 0
        cls_ref = max_ref = sum_ref = wsum_ref = None
        if want_cls:
            cls_ref = outs[oi]; oi += 1
        if want_max:
            max_ref = outs[oi]; oi += 1
        if want_sum:
            sum_ref = outs[oi]; oi += 1
        if want_wsum:
            wsum_ref = outs[oi]; oi += 1

        TB, _, TD = x_ref.shape
        s_id = pl.program_id(2)

        @pl.when(s_id == 0)
        def _init():
            if cls_ref is not None:
                cls_ref[...] = x_ref[:, 0, :].astype(jnp.float32)
            if max_ref is not None:
                max_ref[...] = jnp.full((TB, TD), NEG_INF, dtype=jnp.float32)
            if sum_ref is not None:
                sum_ref[...] = jnp.zeros((TB, TD), dtype=jnp.float32)
            if wsum_ref is not None:
                wsum_ref[...] = jnp.zeros((TB, TD), dtype=jnp.float32)

        acc_refs = [r for r in (max_ref, sum_ref, wsum_ref) if r is not None]
        if not acc_refs:
            return

        # Absolute chunk index of the first chunk in this S block (mask blocks
        # cover the whole padded sequence, so they are indexed absolutely).
        chunk_base = s_id * n_chunk if has_s_axis else 0

        def accumulate(xc, mc3, wc3, carry):
            # xc: (TB, CS, TD) f32 ; mc3/wc3: (TB, CS, 1) f32
            new = []
            k = 0
            if max_ref is not None:
                masked = jnp.where(mc3 == 0.0, jnp.float32(NEG_INF), xc)
                new.append(jnp.maximum(carry[k], jnp.max(masked, axis=1)))
                k += 1
            if sum_ref is not None:
                new.append(carry[k]
                           + jnp.sum(jnp.where(mc3 != 0.0, xc * mc3, 0.0), axis=1))
                k += 1
            if wsum_ref is not None:
                new.append(carry[k]
                           + jnp.sum(jnp.where(wc3 != 0.0, xc * wc3, 0.0), axis=1))
                k += 1
            return tuple(new)

        carry = tuple(r[...] for r in acc_refs)

        if n_chunk <= _STATIC_UNROLL_MAX:
            for c in range(n_chunk):
                xc = x_ref[:, c * CS:(c + 1) * CS, :].astype(jnp.float32)
                mc3 = mask_ref[chunk_base + c][:, :, None]
                wc3 = wmask_ref[chunk_base + c][:, :, None] if need_w else None
                carry = accumulate(xc, mc3, wc3, carry)
        else:
            def body(c, cr):
                start = pl.multiple_of(c * CS, CS)
                xc = x_ref[:, pl.ds(start, CS), :].astype(jnp.float32)
                mc3 = mask_ref[chunk_base + c][:, :, None]
                wc3 = wmask_ref[chunk_base + c][:, :, None] if need_w else None
                return accumulate(xc, mc3, wc3, cr)
            carry = lax.fori_loop(0, n_chunk, body, carry)

        for r, v in zip(acc_refs, carry):
            r[...] = v

    return kernel


def _pooling_kernel_call(kflags, token_embeddings, attention_mask):
    """Run the pooling kernel; returns one (B, D) f32 array per kernel output."""
    B, S, D = token_embeddings.shape
    budget, vmem_limit, is_v7x = _device_budgets()
    itemsize = jnp.dtype(token_embeddings.dtype).itemsize

    TB, TS, TD, CS, ns = _choose_tiles(B, S, D, itemsize, budget, is_v7x)
    nb, nd = pl.cdiv(B, TB), pl.cdiv(D, TD)
    S_pad = ns * TS
    n_chunks_total = S_pad // CS

    mask_f32 = attention_mask.astype(jnp.float32)              # (B, S), tiny

    def chunked(m):
        if S_pad != S:
            m = jnp.pad(m, ((0, 0), (0, S_pad - S)))            # zero-pad (tiny)
        return jnp.transpose(m.reshape(B, n_chunks_total, CS), (1, 0, 2))

    inputs = [chunked(mask_f32)]
    in_specs = [pl.BlockSpec((n_chunks_total, TB, CS), lambda b, d, s: (0, b, 0))]
    if kflags["weightedmean"]:
        w = jnp.arange(1, S + 1, dtype=jnp.float32)[None, :]    # pre-folded weights
        inputs.append(chunked(mask_f32 * w))
        in_specs.append(pl.BlockSpec((n_chunks_total, TB, CS),
                                     lambda b, d, s: (0, b, 0)))
    inputs.append(token_embeddings)                             # native dtype, no pad
    in_specs.append(pl.BlockSpec((TB, TS, TD), lambda b, d, s: (b, s, d)))

    n_out = _num_kernel_outputs(kflags)
    kernel = _make_pool_kernel(kflags, TS, CS, ns > 1)

    outs = pl.pallas_call(
        kernel,
        out_shape=tuple(jax.ShapeDtypeStruct((B, D), jnp.float32)
                        for _ in range(n_out)),
        grid=(nb, nd, ns),
        in_specs=in_specs,
        out_specs=tuple(pl.BlockSpec((TB, TD), lambda b, d, s: (b, d))
                        for _ in range(n_out)),
        compiler_params=pltpu.CompilerParams(
            dimension_semantics=("parallel", "parallel", "arbitrary"),
            vmem_limit_bytes=vmem_limit),
    )(*inputs)

    if n_out == 1 and not isinstance(outs, (tuple, list)):
        outs = (outs,)
    return list(outs)


class INSTRUCTORPoolingPallas:
    """JAX/Pallas port of INSTRUCTOR_Pooling (forward semantics)."""

    def __init__(self, word_embedding_dimension, pooling_mode=None,
                 pooling_mode_cls_token=False, pooling_mode_max_tokens=False,
                 pooling_mode_mean_tokens=True, pooling_mode_mean_sqrt_len_tokens=False,
                 pooling_mode_weightedmean_tokens=False, pooling_mode_lasttoken=False):
        if pooling_mode is not None:
            pooling_mode = pooling_mode.lower()
            assert pooling_mode in ["mean", "max", "cls", "weightedmean", "lasttoken"]
            pooling_mode_cls_token = pooling_mode == "cls"
            pooling_mode_max_tokens = pooling_mode == "max"
            pooling_mode_mean_tokens = pooling_mode == "mean"
            pooling_mode_weightedmean_tokens = pooling_mode == "weightedmean"
            pooling_mode_lasttoken = pooling_mode == "lasttoken"

        self.word_embedding_dimension = word_embedding_dimension
        self.flags = dict(
            cls=pooling_mode_cls_token,
            max=pooling_mode_max_tokens,
            mean=pooling_mode_mean_tokens,
            mean_sqrt=pooling_mode_mean_sqrt_len_tokens,
            weightedmean=pooling_mode_weightedmean_tokens,
            lasttoken=pooling_mode_lasttoken,
        )
        mult = sum([pooling_mode_cls_token, pooling_mode_max_tokens,
                    pooling_mode_mean_tokens, pooling_mode_mean_sqrt_len_tokens,
                    pooling_mode_weightedmean_tokens, pooling_mode_lasttoken])
        self.pooling_output_dimension = mult * word_embedding_dimension

    def __call__(self, features):
        token_embeddings = features["token_embeddings"]
        attention_mask = features["attention_mask"]
        flags = self.flags
        B, S, D = token_embeddings.shape
        mask_f32 = attention_mask.astype(jnp.float32)

        has_cls_override = "cls_token_embeddings" in features
        streaming = (flags["max"] or flags["mean"] or flags["mean_sqrt"]
                     or flags["weightedmean"])

        # cls is computed in-kernel only when the tensor is streamed anyway and
        # no override was supplied; lasttoken is always an epilogue gather.
        kflags = dict(cls=flags["cls"] and (not has_cls_override) and streaming,
                      max=flags["max"], mean=flags["mean"],
                      mean_sqrt=flags["mean_sqrt"],
                      weightedmean=flags["weightedmean"])

        outs = []
        if _num_kernel_outputs(kflags) > 0:
            outs = _pooling_kernel_call(kflags, token_embeddings, attention_mask)
        idx = 0
        output_vectors = []

        if flags["cls"]:
            if has_cls_override:
                cls_tok = features["cls_token_embeddings"].astype(jnp.float32)
            elif kflags["cls"]:
                cls_tok = outs[idx]; idx += 1
            else:
                cls_tok = token_embeddings[:, 0, :].astype(jnp.float32)
            output_vectors.append(cls_tok)

        if flags["max"]:
            output_vectors.append(outs[idx]); idx += 1

        if flags["mean"] or flags["mean_sqrt"]:
            sum_embeddings = outs[idx]; idx += 1
            if "token_weights_sum" in features:
                sum_mask = features["token_weights_sum"].astype(jnp.float32)[:, None]
            else:
                sum_mask = jnp.sum(mask_f32, axis=1, keepdims=True)
            sum_mask = jnp.maximum(sum_mask, 1e-9)
            if flags["mean"]:
                output_vectors.append(sum_embeddings / sum_mask)
            if flags["mean_sqrt"]:
                output_vectors.append(sum_embeddings / jnp.sqrt(sum_mask))

        if flags["weightedmean"]:
            wsum_embeddings = outs[idx]; idx += 1
            if "token_weights_sum" in features:
                sum_mask = features["token_weights_sum"].astype(jnp.float32)[:, None]
            else:
                w = jnp.arange(1, S + 1, dtype=jnp.float32)[None, :]
                sum_mask = jnp.sum(mask_f32 * w, axis=1, keepdims=True)
            sum_mask = jnp.maximum(sum_mask, 1e-9)
            output_vectors.append(wsum_embeddings / sum_mask)

        if flags["lasttoken"]:
            gi = jnp.maximum(jnp.argmin(attention_mask, axis=1) - 1, 0)      # (B,)
            last = jnp.take_along_axis(token_embeddings, gi[:, None, None],
                                       axis=1)[:, 0, :]
            last_m = jnp.take_along_axis(mask_f32, gi[:, None], axis=1)       # (B,1)
            output_vectors.append(last.astype(jnp.float32) * last_m)

        output_vector = jnp.concatenate(output_vectors, axis=1)
        features = dict(features)
        features["sentence_embedding"] = output_vector
        return features


def _reference_forward(flags, token_embeddings, attention_mask):
    """Pure-JAX mirror of the torch forward, for correctness checking."""
    x = token_embeddings.astype(jnp.float32)
    m = attention_mask.astype(jnp.float32)[:, :, None]     # (B, S, 1)
    B, S, D = x.shape
    outs = []
    if flags["cls"]:
        outs.append(x[:, 0])
    if flags["max"]:
        outs.append(jnp.max(jnp.where(m == 0.0, NEG_INF, x), axis=1))
    if flags["mean"] or flags["mean_sqrt"]:
        s = jnp.sum(x * m, axis=1)
        c = jnp.maximum(jnp.sum(m, axis=1), 1e-9)
        if flags["mean"]:
            outs.append(s / c)
        if flags["mean_sqrt"]:
            outs.append(s / jnp.sqrt(c))
    if flags["weightedmean"]:
        w = jnp.arange(1, S + 1, dtype=jnp.float32)[None, :, None]
        mw = m * w
        s = jnp.sum(x * mw, axis=1)
        c = jnp.maximum(jnp.sum(mw, axis=1), 1e-9)
        outs.append(s / c)
    if flags["lasttoken"]:
        gi = jnp.maximum(jnp.argmin(attention_mask, axis=1) - 1, 0)
        xm = x * m
        outs.append(xm[jnp.arange(B), gi])
    return jnp.concatenate(outs, axis=1)


if __name__ == "__main__":
    key = jax.random.PRNGKey(0)
    k1, k2, k3 = jax.random.split(key, 3)

    # Case 1: f32 input, D < 128 (full-D tile), default mean pooling.
    B, S, D = 2, 8, 32
    token_embeddings = jax.random.normal(k1, (B, S, D), dtype=jnp.float32)
    attention_mask = jnp.array(
        [[1, 1, 1, 1, 1, 0, 0, 0],
         [1, 1, 1, 1, 1, 1, 1, 1]], dtype=jnp.float32)
    features = {"token_embeddings": token_embeddings,
                "attention_mask": attention_mask}

    pool_mean = INSTRUCTORPoolingPallas(word_embedding_dimension=D)
    out_mean = pool_mean(dict(features))["sentence_embedding"]
    jax.block_until_ready(out_mean)
    ref_mean = _reference_forward(pool_mean.flags, token_embeddings, attention_mask)
    assert out_mean.shape == (B, pool_mean.pooling_output_dimension)
    assert jnp.allclose(out_mean, ref_mean, atol=1e-5, rtol=1e-5)

    # Case 2: every pooling mode enabled at once.
    pool_all = INSTRUCTORPoolingPallas(
        word_embedding_dimension=D,
        pooling_mode_cls_token=True,
        pooling_mode_max_tokens=True,
        pooling_mode_mean_tokens=True,
        pooling_mode_mean_sqrt_len_tokens=True,
        pooling_mode_weightedmean_tokens=True,
        pooling_mode_lasttoken=True,
    )
    out_all = pool_all(dict(features))["sentence_embedding"]
    jax.block_until_ready(out_all)
    ref_all = _reference_forward(pool_all.flags, token_embeddings, attention_mask)
    assert out_all.shape == (B, pool_all.pooling_output_dimension)
    assert jnp.allclose(out_all, ref_all, atol=1e-5, rtol=1e-5)

    # Case 3: bf16 embeddings in native dtype, B > 8 (partial batch-edge block,
    # no host padding), max + weightedmean + lasttoken.
    B3, S3, D3 = 10, 16, 256
    x3 = jax.random.normal(k2, (B3, S3, D3), dtype=jnp.bfloat16)
    lens = jnp.array([16, 3, 7, 16, 1, 9, 12, 5, 16, 2])
    mask3 = (jnp.arange(S3)[None, :] < lens[:, None]).astype(jnp.float32)
    pool_mix = INSTRUCTORPoolingPallas(
        word_embedding_dimension=D3,
        pooling_mode_mean_tokens=False,
        pooling_mode_max_tokens=True,
        pooling_mode_weightedmean_tokens=True,
        pooling_mode_lasttoken=True,
    )
    out_mix = pool_mix({"token_embeddings": x3,
                        "attention_mask": mask3})["sentence_embedding"]
    jax.block_until_ready(out_mix)
    ref_mix = _reference_forward(pool_mix.flags, x3, mask3)
    assert out_mix.shape == (B3, pool_mix.pooling_output_dimension)
    assert jnp.allclose(out_mix, ref_mix, atol=1e-4, rtol=1e-4)

    # Case 4: cls-only configuration (kernel skipped; plain row-0 slice).
    pool_cls = INSTRUCTORPoolingPallas(word_embedding_dimension=D, pooling_mode="cls")
    out_cls = pool_cls(dict(features))["sentence_embedding"]
    jax.block_until_ready(out_cls)
    assert jnp.allclose(out_cls, token_embeddings[:, 0, :], atol=1e-6)

    # Case 5: forced small block budget to exercise the S ("arbitrary") grid
    # axis, cross-block accumulation, S padding/masking and the fori_loop path.
    _BUDGET_OVERRIDE = 3 * 1024 * 1024
    B5, S5, D5 = 4, 2000, 128
    x5 = jax.random.normal(k3, (B5, S5, D5), dtype=jnp.float32)
    lens5 = jnp.array([2000, 37, 1999, 800])
    mask5 = (jnp.arange(S5)[None, :] < lens5[:, None]).astype(jnp.float32)
    pool_long = INSTRUCTORPoolingPallas(
        word_embedding_dimension=D5,
        pooling_mode_mean_tokens=True,
        pooling_mode_max_tokens=True,
        pooling_mode_weightedmean_tokens=True,
    )
    out_long = pool_long({"token_embeddings": x5,
                          "attention_mask": mask5})["sentence_embedding"]
    jax.block_until_ready(out_long)
    ref_long = _reference_forward(pool_long.flags, x5, mask5)
    assert out_long.shape == (B5, pool_long.pooling_output_dimension)
    assert jnp.allclose(out_long, ref_long, atol=2e-4, rtol=2e-4)
    _BUDGET_OVERRIDE = None

    print("KERNEL_OK")
</pallas_src>

<mosaic_0001>
module attributes {stable_mosaic.version = 11 : i64} {
  func.func @kernel(%arg0: i32, %arg1: i32, %arg2: i32, %arg3: memref<1x2x64xf32, #tpu.memory_space<vmem>>, %arg4: memref<2x64x32xf32, #tpu.memory_space<vmem>>, %arg5: memref<2x32xf32, #tpu.memory_space<vmem>>) attributes {dimension_semantics = [#tpu.dimension_semantics<parallel>, #tpu.dimension_semantics<parallel>, #tpu.dimension_semantics<arbitrary>], iteration_bounds = array<i64: 1, 1, 1>, scalar_prefetch = 0 : i64, scratch_operands = 0 : i64, tpu.core_type = #tpu.core_type<tc>, window_params = [{transform_indices = @transform_0, window_bounds = array<i64: 1, 2, 64>}, {transform_indices = @transform_1, window_bounds = array<i64: 2, 64, 32>}, {transform_indices = @transform_2, window_bounds = array<i64: 2, 32>}]} {
    %c0_i32 = arith.constant 0 : i32
    %0 = arith.cmpi eq, %arg2, %c0_i32 : i32
    %1 = arith.extui %0 : i1 to i32
    %c0_i32_0 = arith.constant 0 : i32
    %2 = arith.cmpi ne, %1, %c0_i32_0 : i32
    scf.if %2 {
      %cst_12 = arith.constant 0.000000e+00 : f32
      %19 = vector.broadcast %cst_12 : f32 to vector<2x32xf32>
      %c0_13 = arith.constant 0 : index
      %c0_14 = arith.constant 0 : index
      %20 = vector.load %arg5[%c0_13, %c0_14] : memref<2x32xf32, #tpu.memory_space<vmem>>, vector<2x32xf32>
      tpu.vector_store %arg5[%c0_13, %c0_14], %19 {strides = array<i32>} : memref<2x32xf32, #tpu.memory_space<vmem>>, vector<2x32xf32>,
    } else {
    }
    %c0 = arith.constant 0 : index
    %c0_1 = arith.constant 0 : index
    %3 = vector.load %arg5[%c0, %c0_1] : memref<2x32xf32, #tpu.memory_space<vmem>>, vector<2x32xf32>
    %c0_2 = arith.constant 0 : index
    %c0_3 = arith.constant 0 : index
    %c0_4 = arith.constant 0 : index
    %4 = vector.load %arg4[%c0_2, %c0_3, %c0_4] : memref<2x64x32xf32, #tpu.memory_space<vmem>>, vector<2x64x32xf32>
    %c0_5 = arith.constant 0 : index
    %c0_6 = arith.constant 0 : index
    %c0_7 = arith.constant 0 : index
    %5 = vector.load %arg3[%c0_5, %c0_6, %c0_7] : memref<1x2x64xf32, #tpu.memory_space<vmem>>, vector<1x2x64xf32>
    %6 = vector.shape_cast %5 : vector<1x2x64xf32> to vector<2x64xf32>
    %7 = vector.shape_cast %6 : vector<2x64xf32> to vector<2x64x1xf32>
    %cst = arith.constant 0.000000e+00 : f32
    %8 = vector.broadcast %cst : f32 to vector<2x64x1xf32>
    %9 = arith.cmpf one, %7, %8 : vector<2x64x1xf32>
    %10 = vector.broadcast %7 : vector<2x64x1xf32> to vector<2x64x32xf32>
    %11 = arith.mulf %4, %10 : vector<2x64x32xf32>
    %cst_8 = arith.constant 0.000000e+00 : f32
    %12 = vector.shape_cast %9 : vector<2x64x1xi1> to vector<2x64x1xi1>
    %13 = vector.broadcast %12 : vector<2x64x1xi1> to vector<2x64x32xi1>
    %14 = vector.broadcast %cst_8 : f32 to vector<2x64x32xf32>
    %15 = arith.select %13, %11, %14 : vector<2x64x32xi1>, vector<2x64x32xf32>
    %cst_9 = arith.constant dense<0.000000e+00> : vector<2x32xf32>
    %16 = vector.multi_reduction <add>, %15, %cst_9 [1] : vector<2x64x32xf32> to vector<2x32xf32>
    %17 = arith.addf %3, %16 : vector<2x32xf32>
    %c0_10 = arith.constant 0 : index
    %c0_11 = arith.constant 0 : index
    %18 = vector.load %arg5[%c0_10, %c0_11] : memref<2x32xf32, #tpu.memory_space<vmem>>, vector<2x32xf32>
    tpu.vector_store %arg5[%c0_10, %c0_11], %17 {strides = array<i32>} : memref<2x32xf32, #tpu.memory_space<vmem>>, vector<2x32xf32>,
    return
  }
  func.func @transform_0(%arg0: i32, %arg1: i32, %arg2: i32) -> (i32, i32, i32) {
    %c0_i32 = arith.constant 0 : i32
    %c0_i32_0 = arith.constant 0 : i32
    %c0_i32_1 = arith.constant 0 : i32
    return %c0_i32, %arg0, %c0_i32_0 : i32, i32, i32
  }
  func.func @transform_1(%arg0: i32, %arg1: i32, %arg2: i32) -> (i32, i32, i32) {
    %c0_i32 = arith.constant 0 : i32
    return %arg0, %arg2, %arg1 : i32, i32, i32
  }
  func.func @transform_2(%arg0: i32, %arg1: i32, %arg2: i32) -> (i32, i32) {
    %c0_i32 = arith.constant 0 : i32
    return %arg0, %arg1 : i32, i32
  }
}

</mosaic_0001>

<bundles_post_ra>
// kernel: tpu_custom_call.1
= control target key start
LH: loop header
LB: loop body
LE: loop exit
PB: predicated region body
PF: predicated region fallthrough
CT: control target
= control target key end

     0   :  { %7 = vsyncpa [#allocation3], 0  ;;  %s414_s0 = inlined_call_operand.hbm [shape: f32[1,2,64], index: 0, kind: input, shape index: {}]   ;;  %s415_s1 = inlined_call_operand.hbm [shape: f32[2,8,32], index: 1, kind: input, shape index: {}]   ;;  %s416_s2 = inlined_call_operand.hbm [shape: f32[2,32], index: 2, kind: output, shape index: {}]  }
   0x1   :  { %8 = vsyncpa [#allocation6], 0 }
   0x2   :  { %9 = vsyncpa [#allocation4], 0  ;;  %s362_s9 = smov [#allocation2]  }
   0x3   :  { %s16_s10 = sshll.u32 %s362_s9, 4  ;;  %s17_s10 = int_to_ptr.vmem [resolvable:$true] %s16_s10 }
   0x4   :  { %s324_s11 = scalar_lea.vmem %s17_s10, 32  ;;  %p329_p1 = scmp.lt.s32.totalorder %s17_s10, %s17_s10 }
   0x5   :  { %p325_p0 = scmp.ne.s32.totalorder %s17_s10, %s324_s11  ;;  %p330_p2 = scmp.lt.s32.totalorder %s324_s11, %s324_s11 }
   0x7   :  { %p331_p3 = por %p330_p2, %p329_p1 }
   0x9   :  { %p332_p4 = pnand %p331_p3, %p325_p0 }
   0xb   :  { %335 = shalt.err (!%p332_p4)
}
   0xc   :  { %19 = dma.hbm_to_vmem [thread:$0]  %s414_s0, 32, %s17_s10, [#allocation3]  }
   0xd   :  { %24 = vsyncadd [#allocation6], 1792  ;;  %s29_s14 = sld [smem:[#allocation0]]   ;;  %s363_s15 = smov [#allocation5]  }
   0xe   :  { %s37_s16 = sshll.u32 %s363_s15, 4  ;;  %s364_s17 = smov 128   ;;  %s38_s16 = int_to_ptr.vmem [resolvable:$true] %s37_s16 }
   0xf   :  { %44 = sst [smem:[#allocation9]] %s364_s17  ;;  %s365_s18 = smov 1024  }
  0x10   :  { %46 = sst [smem:[#allocation9 + $0x1]] %s365_s18  ;;  %s366_s19 = smov 1  }
  0x11   :  { %48 = sst [smem:[#allocation9 + $0x2]] %s366_s19  ;;  %s367_s22 = smov 8  }
  0x12   :  { %50 = sst [smem:[#allocation9 + $0x3]] %s364_s17  ;;  %s368_s23 = smov [#allocation6]  }
  0x13   :  { %s304_s20 = sshll.u32 %s29_s14, 26  ;;  %52 = sst [smem:[#allocation9 + $0x4]] %s364_s17 }
  0x14   :  { %s305_s21 = sadd.s32 134217728, %s304_s20  ;;  %54 = sst [smem:[#allocation9 + $0x5]] %s367_s22 }
  0x15   :  { %s369_s24 = smov 131072  }
  0x16   :  { %56 = dma.general %s415_s1, 256, %s38_s16, %s368_s23, %s369_s24, [#allocation9], %s305_s21, 0  }
  0x17   :  { %356 = dma.done.wait [#allocation3], 32  }
  0x18   :  { %357 = vsyncadd [#allocation3], 4294967264 }
  0x19   :  { %358 = dma.done.wait [#allocation6], 2048  }
  0x1a   :  { %359 = vsyncadd [#allocation6], 4294965248  ;;  %v87_v0 = vlaneseq  ;;  %v86_v4 = vld [vmem:[#allocation2] sm:$0x3]  ;;  %vm67_vm0 = vcmask 254976   ;;  %v370_v7 = vmov 0.0  }
  0x1b   :  { %68 = vst.msk [vmem:[#allocation7] sm:$0x3] %vm67_vm0, %v370_v7  ;;  %v79_v12 = vld [vmem:[#allocation5 + $0x48] sm:$0xff]  ;;  %v78_v14 = vld [vmem:[#allocation5 + $0x40] sm:$0xff]  ;;  %v80_v20 = vld [vmem:[#allocation5 + $0x50] sm:$0xff]  ;;  %vm237_vm6 = vcmask 261120  }
  0x1c   :  { %v88_v1 = vshrl.u32 %v87_v0, 7  ;;  %v71_v13 = vld [vmem:[#allocation5 + $0x8] sm:$0xff]  ;;  %v70_v17 = vld [vmem:[#allocation5] sm:$0xff]  ;;  %v72_v22 = vld [vmem:[#allocation5 + $0x10] sm:$0xff]  ;;  %s371_s1 = smov [#allocation7]  }
  0x1d   :  { %v81_v25 = vld [vmem:[#allocation5 + $0x58] sm:$0xff]  ;;  %v82_v32 = vld [vmem:[#allocation5 + $0x60] sm:$0xff]  ;;  %v83_v46 = vld [vmem:[#allocation5 + $0x68] sm:$0xff]  ;;  %s294_s26 = sshll.u32 %s371_s1, 4  ;;  %s295_s26 = int_to_ptr.vmem [resolvable:$true] %s294_s26 }
  0x1e   :  { %v124_v2 = vsub.s32 1, %v88_v1  ;;  %v89_v3 = vsub.s32 0, %v88_v1  ;;  %v73_v29 = vld [vmem:[#allocation5 + $0x18] sm:$0xff]  ;;  %v74_v35 = vld [vmem:[#allocation5 + $0x20] sm:$0xff]  ;;  %v75_v50 = vld [vmem:[#allocation5 + $0x28] sm:$0xff]  ;;  %s336_s27 = scalar_lea.vmem %s295_s26, 32  ;;  %p341_p6 = scmp.lt.s32.totalorder %s295_s26, %s295_s26 }
  0x1f   :  { %v84_v63 = vld [vmem:[#allocation5 + $0x70] sm:$0xff]  ;;  %p337_p5 = scmp.ne.s32.totalorder %s295_s26, %s336_s27  ;;  %p342_p7 = scmp.lt.s32.totalorder %s336_s27, %s336_s27 }
  0x20   :  { %v125_v5 = vrot.slane %v86_v4, %v124_v2  ;;  %v90_v6 = vrot.slane %v86_v4, %v89_v3  ;;  %v76_v3 = vld [vmem:[#allocation5 + $0x30] sm:$0xff] }
  0x21   :  { %p343_p8 = por %p342_p7, %p341_p6 }
  0x22   :  { %127 = vbcast.lane.b32.xlu1 %v125_v5, 256  ;;  %92 = vbcast.lane.b32.xlu0 %v90_v6, 256 }
  0x23   :  { %p344_p9 = pnand %p343_p8, %p337_p5 }
  0x26   :  { %131 = vbcast.lane.b32.xlu1 %v125_v5, 264  ;;  %96 = vbcast.lane.b32.xlu0 %v90_v6, 264 }
  0x2a   :  { %135 = vbcast.lane.b32.xlu1 %v125_v5, 272  ;;  %100 = vbcast.lane.b32.xlu0 %v90_v6, 272 }
  0x2e   :  { %139 = vbcast.lane.b32.xlu1 %v125_v5, 280  ;;  %104 = vbcast.lane.b32.xlu0 %v90_v6, 280 }
  0x32   :  { %143 = vbcast.lane.b32.xlu1 %v125_v5, 288  ;;  %108 = vbcast.lane.b32.xlu0 %v90_v6, 288 }
  0x36   :  { %147 = vbcast.lane.b32.xlu1 %v125_v5, 296  ;;  %112 = vbcast.lane.b32.xlu0 %v90_v6, 296 }
  0x3a   :  { %151 = vbcast.lane.b32.xlu1 %v125_v5, 304  ;;  %116 = vbcast.lane.b32.xlu0 %v90_v6, 304 }
  0x3e   :  { %155 = vbcast.lane.b32.xlu1 %v125_v5, 312  ;;  %120 = vbcast.lane.b32.xlu0 %v90_v6, 312 }
  0x94   :  { %v128_v8 = vpop.permute.xlu1 %127  ;;  %v93_v9 = vpop.permute.xlu0 %92 }
  0x95   :  { %v181_v21 = vmul.f32 %v128_v8, %v78_v14  ;;  %vm165_vm3 = vcmp.ne.f32.partialorder %v128_v8, 0.0  ;;  %v173_v23 = vmul.f32 %v93_v9, %v70_v17  ;;  %vm157_vm4 = vcmp.ne.f32.partialorder %v93_v9, 0.0 }
  0x97   :  { %v229_v33 = vsel %vm165_vm3, %v181_v21, 0.0  ;;  %v221_v36 = vsel %vm157_vm4, %v173_v23, 0.0  ;;  %vm282_vm3 = vcmask 1041409  }
  0x98   :  { %v132_v10 = vpop.permute.xlu1 %131  ;;  %v97_v11 = vpop.permute.xlu0 %96  ;;  %v259_v47 = vsel %vm237_vm6, %v229_v33, 0.0  ;;  %v238_v48 = vsel %vm237_vm6, %v221_v36, 0.0 }
  0x99   :  { %v182_v18 = vmul.f32 %v132_v10, %v79_v12  ;;  %vm166_vm1 = vcmp.ne.f32.partialorder %v132_v10, 0.0  ;;  %v174_v19 = vmul.f32 %v97_v11, %v71_v13  ;;  %vm158_vm2 = vcmp.ne.f32.partialorder %v97_v11, 0.0 }
  0x9b   :  { %v230_v27 = vsel %vm166_vm1, %v182_v18, 0.0  ;;  %v222_v30 = vsel %vm158_vm2, %v174_v19, 0.0  ;;  %v77_v19 = vld [vmem:[#allocation5 + $0x38] sm:$0xff] }
  0x9c   :  { %v136_v15 = vpop.permute.xlu1 %135  ;;  %v101_v16 = vpop.permute.xlu0 %100  ;;  %v260_v37 = vsel %vm237_vm6, %v230_v27, 0.0  ;;  %v239_v41 = vsel %vm237_vm6, %v222_v30, 0.0 }
  0x9d   :  { %v183_v28 = vmul.f32 %v136_v15, %v80_v20  ;;  %vm167_vm5 = vcmp.ne.f32.partialorder %v136_v15, 0.0  ;;  %v175_v31 = vmul.f32 %v101_v16, %v72_v22  ;;  %vm159_vm7 = vcmp.ne.f32.partialorder %v101_v16, 0.0  ;;  %v85_v15 = vld [vmem:[#allocation5 + $0x78] sm:$0xff] }
  0x9e   :  { %v261_v51 = vadd.f32 %v260_v37, %v259_v47  ;;  %v240_v52 = vadd.f32 %v239_v41, %v238_v48 }
  0x9f   :  { %v231_v42 = vsel %vm167_vm5, %v183_v28, 0.0  ;;  %v223_v44 = vsel %vm159_vm7, %v175_v31, 0.0 }
  0xa0   :  { %v140_v24 = vpop.permute.xlu1 %139  ;;  %v105_v26 = vpop.permute.xlu0 %104  ;;  %v262_v53 = vsel %vm237_vm6, %v231_v42, 0.0  ;;  %v241_v57 = vsel %vm237_vm6, %v223_v44, 0.0 }
  0xa1   :  { %v184_v34 = vmul.f32 %v140_v24, %v81_v25  ;;  %vm168_vm8 = vcmp.ne.f32.partialorder %v140_v24, 0.0  ;;  %v176_v38 = vmul.f32 %v105_v26, %v73_v29  ;;  %vm160_vm9 = vcmp.ne.f32.partialorder %v105_v26, 0.0 }
  0xa2   :  { %v263_v0 = vadd.f32 %v262_v53, %v261_v51  ;;  %v242_v4 = vadd.f32 %v241_v57, %v240_v52 }
  0xa3   :  { %v232_v49 = vsel %vm168_vm8, %v184_v34, 0.0  ;;  %v224_v54 = vsel %vm160_vm9, %v176_v38, 0.0 }
  0xa4   :  { %v144_v39 = vpop.permute.xlu1 %143  ;;  %v109_v40 = vpop.permute.xlu0 %108  ;;  %v264_v60 = vsel %vm237_vm6, %v232_v49, 0.0  ;;  %v243_v1 = vsel %vm237_vm6, %v224_v54, 0.0 }
  0xa5   :  { %v185_v43 = vmul.f32 %v144_v39, %v82_v32  ;;  %vm169_vm10 = vcmp.ne.f32.partialorder %v144_v39, 0.0  ;;  %v177_v45 = vmul.f32 %v109_v40, %v74_v35  ;;  %vm161_vm11 = vcmp.ne.f32.partialorder %v109_v40, 0.0 }
  0xa6   :  { %v265_v9 = vadd.f32 %v264_v60, %v263_v0  ;;  %v244_v12 = vadd.f32 %v243_v1, %v242_v4 }
  0xa7   :  { %v233_v58 = vsel %vm169_vm10, %v185_v43, 0.0  ;;  %v225_v61 = vsel %vm161_vm11, %v177_v45, 0.0 }
  0xa8   :  { %v148_v55 = vpop.permute.xlu1 %147  ;;  %v113_v56 = vpop.permute.xlu0 %112  ;;  %v266_v5 = vsel %vm237_vm6, %v233_v58, 0.0  ;;  %v245_v10 = vsel %vm237_vm6, %v225_v61, 0.0 }
  0xa9   :  { %vm170_vm12 = vcmp.ne.f32.partialorder %v148_v55, 0.0  ;;  %v186_v59 = vmul.f32 %v148_v55, %v83_v46  ;;  %vm162_vm13 = vcmp.ne.f32.partialorder %v113_v56, 0.0  ;;  %v178_v62 = vmul.f32 %v113_v56, %v75_v50  ;;  %v69_v50 = vld [vmem:[#allocation7] sm:$0x3] }
  0xaa   :  { %v267_v16 = vadd.f32 %v266_v5, %v265_v9  ;;  %v246_v20 = vadd.f32 %v245_v10, %v244_v12 }
  0xab   :  { %v234_v2 = vsel %vm170_vm12, %v186_v59, 0.0  ;;  %v226_v6 = vsel %vm162_vm13, %v178_v62, 0.0 }
  0xac   :  { %v152_v7 = vpop.permute.xlu1 %151  ;;  %v117_v8 = vpop.permute.xlu0 %116  ;;  %v268_v13 = vsel %vm237_vm6, %v234_v2, 0.0  ;;  %v247_v17 = vsel %vm237_vm6, %v226_v6, 0.0 }
  0xad   :  { %vm171_vm14 = vcmp.ne.f32.partialorder %v152_v7, 0.0  ;;  %v187_v11 = vmul.f32 %v152_v7, %v84_v63  ;;  %vm163_vm15 = vcmp.ne.f32.partialorder %v117_v8, 0.0  ;;  %v179_v14 = vmul.f32 %v117_v8, %v76_v3 }
  0xae   :  { %v269_v25 = vadd.f32 %v268_v13, %v267_v16  ;;  %v248_v28 = vadd.f32 %v247_v17, %v246_v20 }
  0xaf   :  { %v235_v18 = vsel %vm171_vm14, %v187_v11, 0.0  ;;  %v227_v22 = vsel %vm163_vm15, %v179_v14, 0.0 }
  0xb0   :  { %v270_v21 = vsel %vm237_vm6, %v235_v18, 0.0  ;;  %v156_v23 = vpop.permute.xlu1 %155  ;;  %v121_v24 = vpop.permute.xlu0 %120  ;;  %v249_v26 = vsel %vm237_vm6, %v227_v22, 0.0 }
  0xb1   :  { %vm172_vm1 = vcmp.ne.f32.partialorder %v156_v23, 0.0  ;;  %v188_v27 = vmul.f32 %v156_v23, %v85_v15  ;;  %vm164_vm2 = vcmp.ne.f32.partialorder %v121_v24, 0.0  ;;  %v180_v29 = vmul.f32 %v121_v24, %v77_v19 }
  0xb2   :  { %v271_v30 = vadd.f32 %v270_v21, %v269_v25  ;;  %v250_v32 = vadd.f32 %v249_v26, %v248_v28 }
  0xb3   :  { %v236_v31 = vsel %vm172_vm1, %v188_v27, 0.0  ;;  %v228_v34 = vsel %vm164_vm2, %v180_v29, 0.0 }
  0xb4   :  { %v272_v33 = vsel %vm237_vm6, %v236_v31, 0.0  ;;  %v251_v36 = vsel %vm237_vm6, %v228_v34, 0.0 }
  0xb5   :  { %v273_v35 = vadd.f32 %v272_v33, %v271_v30  ;;  %v252_v37 = vadd.f32 %v251_v36, %v250_v32 }
  0xb7   :  { %v274_v38 = vrot.slane %v273_v35, 4  ;;  %v253_v39 = vrot.slane %v252_v37, 4 }
  0xb9   :  { %v275_v40 = vadd.f32 %v274_v38, %v273_v35  ;;  %v254_v41 = vadd.f32 %v253_v39, %v252_v37 }
  0xbb   :  { %v276_v42 = vrot.slane %v275_v40, 2  ;;  %v255_v43 = vrot.slane %v254_v41, 2 }
  0xbd   :  { %v277_v44 = vadd.f32 %v276_v42, %v275_v40  ;;  %v256_v45 = vadd.f32 %v255_v43, %v254_v41 }
  0xbf   :  { %v278_v46 = vrot.slane %v277_v44, 1  ;;  %v257_v47 = vrot.slane %v256_v45, 1 }
  0xc1   :  { %v279_v48 = vadd.f32 %v278_v46, %v277_v44  ;;  %v258_v49 = vadd.f32 %v257_v47, %v256_v45 }
  0xc3   :  { %v283_v51 = vsel %vm282_vm3, %v279_v48, %v258_v49 }
  0xc4   :  { %v285_v52 = vadd.f32 %v283_v51, %v69_v50 }
  0xc6   :  { %287 = vst.msk [vmem:[#allocation7] sm:$0x3] %vm67_vm0, %v285_v52 }
  0xc7   :  { %347 = shalt.err (!%p344_p9)
}
  0xc8   :  { %297 = dma.vmem_to_hbm [thread:$0]  %s295_s26, 32, %s416_s2, [#allocation4]  }
  0xc9   :  { %360 = dma.done.wait [#allocation4], 32  }
  0xca   :  { %361 = vsyncadd [#allocation4], 4294967264 }
  0xcb   :  { %301 = vsyncpa [#allocation3], 1 }
  0xcc   :  { %302 = vsyncpa [#allocation6], 1 }
  0xcd   :  { %303 = vsyncpa [#allocation4], 1 }

</bundles_post_ra>
